<compile_context>
chip_gen: v6e
topology: v6e:2x2x1
jax: 0.10.0
libtpu: 0.0.40
codegen_flags: <defaults>
</compile_context>

<pallas_src>
import math

import jax
import jax.numpy as jnp
from jax.experimental import pallas as pl
from jax.experimental.pallas import tpu as pltpu

FIXED_LEN = 5  # matches the torch module's fixed_len


def _cdiv(a, b):
    return -(-a // b)


def _round_up(a, b):
    return _cdiv(a, b) * b


def _lcm(a, b):
    return a * b // math.gcd(a, b)


# -----------------------------------------------------------------------------
# Pallas kernel: relu(x@W1o + id_bias) @ W2 + b2 -> relu -> . w3 + b3
# -----------------------------------------------------------------------------
def _ac_critic_kernel(x_ref, w1_ref, idb_ref, w2_ref, b2_ref, w3_ref, b3_ref,
                      o_ref):
    # Shapes (T = tile_rows, P = lcm(128, n_agents), H = padded hidden):
    #   x_ref   (T, obs_dim) f32   streamed obs rows for this tile
    #   w1_ref  (obs_dim, H) bf16  resident fc1 weight (obs columns only)
    #   idb_ref (P, H)       f32   resident: b1 + one_hot(agent) @ W1_id, one period
    #   w2_ref  (H, H) bf16, b2_ref (1, H) f32, w3_ref (1, H) f32   resident
    #   b3_ref  (1, 1) f32 SMEM scalar
    #   o_ref   (1, 1, T) f32      lane-dense output tile
    tile_rows = x_ref.shape[0]
    period, hidden = idb_ref.shape
    reps = tile_rows // period  # static; tile_rows % period == 0 by construction

    # fc1 on the MXU in bf16 with f32 accumulation.
    x = x_ref[...].astype(jnp.bfloat16)
    h1 = jnp.dot(x, w1_ref[...], preferred_element_type=jnp.float32)
    # The agent-one-hot fold repeats every `period` rows: tile-preserving reshape
    # broadcast instead of a (T, H) materialized bias.
    h1 = h1.reshape(reps, period, hidden) + idb_ref[...][None]
    h1 = jnp.maximum(h1, 0.0).reshape(tile_rows, hidden)

    # fc2 (bf16 operands, f32 accumulate / element-wise).
    h2 = jnp.dot(h1.astype(jnp.bfloat16), w2_ref[...],
                 preferred_element_type=jnp.float32)
    h2 = jnp.maximum(h2 + b2_ref[...], 0.0)

    # fc3 as (1, H) x (T, H) -> (1, T): transposed-RHS contraction (same pattern as
    # q @ k.T in flash attention, handled natively by the MXU — no full h2 transpose).
    # Per-row scalars land along lanes, so the store below is a dense (unmasked) vst.
    q = jax.lax.dot_general(w3_ref[...], h2, (((1,), (1,)), ((), ())),
                            preferred_element_type=jnp.float32)
    o_ref[0] = (q + b3_ref[0, 0]).astype(o_ref.dtype)


# -----------------------------------------------------------------------------
# VMEM budgeting / tile selection
# -----------------------------------------------------------------------------
def _vmem_capacity_bytes():
    try:
        return int(pltpu.get_tpu_info().vmem_capacity_bytes)
    except Exception:
        return 64 * 1024 * 1024  # conservative fallback (v7x per-TC)


def _vmem_estimate_bytes(tile_rows, obs_dim, hidden_p, row_align, single_buffer):
    lane = 128
    f32, bf16 = 4, 2
    res = 1 if single_buffer else 2

    def lanes(n):
        return _round_up(max(n, 1), lane)

    b = 0
    b += 2 * tile_rows * lanes(obs_dim) * f32            # streamed x (double-buffered)
    b += 2 * 8 * lanes(tile_rows) * f32                  # (1,1,T) output blocks
    b += res * _round_up(obs_dim, 16) * hidden_p * bf16  # w1_obs
    b += res * row_align * hidden_p * f32                # id_bias period
    b += res * hidden_p * hidden_p * bf16                # w2
    b += res * 8 * hidden_p * f32 * 2                    # b2, w3_row (sublane-padded)
    b += 2 * tile_rows * hidden_p * f32                  # h1, h2 f32 intermediates
    b += tile_rows * (lanes(obs_dim) + hidden_p) * bf16  # bf16 casts of x and h1
    return b


def _choose_tile_rows(n_rows, row_align, obs_dim, hidden_p, desired, vmem_budget,
                      single_buffer):
    max_rows = _round_up(max(n_rows, row_align), row_align)
    t = max(min(_round_up(desired, row_align), max_rows), row_align)
    while (t > row_align and
           _vmem_estimate_bytes(t, obs_dim, hidden_p, row_align,
                                single_buffer) > vmem_budget):
        t -= row_align
    # Keep both v7x TensorCores fed: prefer >= 2 grid steps (and an even count)
    # whenever there is enough work for it.
    if max_rows >= 2 * row_align:
        n_tiles = _cdiv(max_rows, t)
        if n_tiles == 1:
            t = _round_up(_cdiv(max_rows, 2), row_align)
        elif n_tiles % 2 == 1:
            t_even = _round_up(_cdiv(max_rows, n_tiles + 1), row_align)
            if t_even >= row_align and _cdiv(max_rows, t_even) % 2 == 0:
                t = t_even
    return t


# -----------------------------------------------------------------------------
# One-time parameter packing (hoisted out of the per-call path)
# -----------------------------------------------------------------------------
def prepare_ac_critic_params(params, *, n_agents, obs_dim):
    """Pack ACCritic weights for the kernel: bf16 matmul operands, hidden padded to a
    lane multiple, and build_inputs folded into one lcm(128, n_agents)-row id_bias."""
    w1, b1, w2, b2, w3, b3 = params
    in_dim, hidden = w1.shape
    assert in_dim == obs_dim + FIXED_LEN
    assert 1 <= n_agents <= FIXED_LEN  # module semantics: eye fits in the 5 one-hot cols

    hidden_p = _round_up(hidden, 128)  # lane / MXU alignment; zero padding is exact
    pad_h = hidden_p - hidden
    row_align = _lcm(128, n_agents)

    # id_bias[r] = b1 + W1[obs_dim + (r % n_agents)]  — valid because rows are
    # flattened agent-fastest and every tile size is a multiple of row_align.
    agent_of_row = jnp.arange(row_align, dtype=jnp.int32) % n_agents
    id_bias = b1[0] + jnp.take(w1[obs_dim:], agent_of_row, axis=0)

    return {
        "w1_obs": jnp.pad(w1[:obs_dim], ((0, 0), (0, pad_h))).astype(jnp.bfloat16),
        "id_bias": jnp.pad(id_bias, ((0, 0), (0, pad_h))).astype(jnp.float32),
        "w2": jnp.pad(w2, ((0, pad_h), (0, pad_h))).astype(jnp.bfloat16),
        "b2": jnp.pad(b2, ((0, 0), (0, pad_h))).astype(jnp.float32),
        "w3_row": jnp.pad(w3.T, ((0, 0), (0, pad_h))).astype(jnp.float32),
        "b3": b3.reshape(1, 1).astype(jnp.float32),
        "obs_dim": obs_dim,
        "hidden_p": hidden_p,
        "row_align": row_align,
        "n_agents": n_agents,
    }


# -----------------------------------------------------------------------------
# Wrapper: pallas_call
# -----------------------------------------------------------------------------
_SINGLE_BUFFER_RESIDENTS = None  # resolved on first kernel build


def _resident_spec(block_shape, single_buffer):
    index_map = lambda i: tuple(0 for _ in block_shape)
    if single_buffer:
        # Grid-invariant block: a single VMEM buffer is enough (default is 2).
        return pl.BlockSpec(block_shape, index_map, pipeline_mode=pl.Buffered(1))
    return pl.BlockSpec(block_shape, index_map)


def ac_critic_mlp(obs_flat, prepared, *, tile_rows=None):
    """obs_flat: [rows, obs_dim] f32 (agent index fastest-varying) -> [rows, 1] f32."""
    global _SINGLE_BUFFER_RESIDENTS
    n_rows, obs_dim = obs_flat.shape
    assert obs_dim == prepared["obs_dim"]
    hidden_p = prepared["hidden_p"]
    row_align = prepared["row_align"]

    # Per-generation budgeting: 128 MiB VMEM on v5e/v6e, 64 MiB per TC on v7x
    # (with a ("parallel",) grid each TC holds its own copy of the resident weights).
    vmem_cap = _vmem_capacity_bytes()
    vmem_limit = min(int(0.85 * vmem_cap), 96 * 1024 * 1024)
    tile_budget = int(0.75 * vmem_limit)
    if tile_rows is None:
        tile_rows = 4096 if vmem_cap >= 96 * 1024 * 1024 else 2048
    single_guess = True if _SINGLE_BUFFER_RESIDENTS is None else _SINGLE_BUFFER_RESIDENTS
    tile_rows = _choose_tile_rows(n_rows, row_align, obs_dim, hidden_p, tile_rows,
                                  tile_budget, single_guess)

    # Only pad rows when the whole problem is smaller than one tile; otherwise the
    # ragged last tile is handled by the grid.  NOTE: the final x block then reads
    # unspecified padding rows — safe because rows are independent and sliced off
    # below; do not add cross-row reductions to the kernel without revisiting this.
    if n_rows < tile_rows:
        obs_flat = jnp.pad(obs_flat, ((0, tile_rows - n_rows), (0, 0)))
    n_tiles = _cdiv(max(n_rows, tile_rows), tile_rows)

    def run(single_buffer):
        in_specs = [
            pl.BlockSpec((tile_rows, obs_dim), lambda i: (i, 0)),   # streamed x
            _resident_spec((obs_dim, hidden_p), single_buffer),      # w1 (bf16)
            _resident_spec((row_align, hidden_p), single_buffer),    # id_bias period
            _resident_spec((hidden_p, hidden_p), single_buffer),     # w2 (bf16)
            _resident_spec((1, hidden_p), single_buffer),            # b2
            _resident_spec((1, hidden_p), single_buffer),            # w3 row
            pl.BlockSpec(memory_space=pltpu.MemorySpace.SMEM),       # b3 scalar
        ]
        return pl.pallas_call(
            _ac_critic_kernel,
            out_shape=jax.ShapeDtypeStruct((n_tiles, 1, tile_rows), jnp.float32),
            grid_spec=pltpu.PrefetchScalarGridSpec(
                num_scalar_prefetch=0,
                grid=(n_tiles,),
                in_specs=in_specs,
                out_specs=pl.BlockSpec((1, 1, tile_rows), lambda i: (i, 0, 0)),
            ),
            compiler_params=pltpu.CompilerParams(
                dimension_semantics=("parallel",),
                vmem_limit_bytes=vmem_limit,
            ),
        )(obs_flat, prepared["w1_obs"], prepared["id_bias"], prepared["w2"],
          prepared["b2"], prepared["w3_row"], prepared["b3"])

    if _SINGLE_BUFFER_RESIDENTS is None:
        try:
            out = jax.block_until_ready(run(True))
            _SINGLE_BUFFER_RESIDENTS = True
        except Exception:
            # Pallas build without BlockSpec(pipeline_mode=pl.Buffered(1)): fall back
            # to the default double-buffering for the resident blocks.
            out = run(False)
            _SINGLE_BUFFER_RESIDENTS = False
    else:
        out = run(_SINGLE_BUFFER_RESIDENTS)

    return out.reshape(n_tiles * tile_rows, 1)[:n_rows]


def ac_critic_forward(obs, prepared, *, tile_rows=None):
    """obs: [bs, max_t, n_agents, obs_dim] -> v: [bs, max_t, n_agents, 1]."""
    bs, max_t, na, obs_dim = obs.shape
    assert na == prepared["n_agents"]
    q_flat = ac_critic_mlp(obs.reshape(bs * max_t * na, obs_dim), prepared,
                           tile_rows=tile_rows)
    return q_flat.reshape(bs, max_t, na, 1)


# -----------------------------------------------------------------------------
# Parameter init (nn.Linear-shaped, stored transposed for x @ W) + pure-JAX ref
# -----------------------------------------------------------------------------
def init_params(key, in_dim, hidden_dim):
    keys = jax.random.split(key, 6)

    def linear(kw, kb, fan_in, fan_out):
        bound = 1.0 / jnp.sqrt(fan_in)
        w = jax.random.uniform(kw, (fan_in, fan_out), jnp.float32, -bound, bound)
        b = jax.random.uniform(kb, (1, fan_out), jnp.float32, -bound, bound)
        return w, b

    w1, b1 = linear(keys[0], keys[1], in_dim, hidden_dim)
    w2, b2 = linear(keys[2], keys[3], hidden_dim, hidden_dim)
    w3, b3 = linear(keys[4], keys[5], hidden_dim, 1)
    return (w1, b1, w2, b2, w3, b3)


def build_inputs(obs, n_agents, fixed_len=FIXED_LEN):
    """Reference _build_inputs: concat obs with the fixed-width agent one-hot."""
    bs, max_t, na, _ = obs.shape
    eye = jnp.zeros((na, fixed_len), obs.dtype).at[:, :na].set(
        jnp.eye(na, dtype=obs.dtype))
    ids = jnp.broadcast_to(eye[None, None], (bs, max_t, na, fixed_len))
    return jnp.concatenate([obs, ids], axis=-1)


def _reference(obs, params, n_agents):
    w1, b1, w2, b2, w3, b3 = params
    hi = jax.lax.Precision.HIGHEST
    x = build_inputs(obs, n_agents)
    h1 = jax.nn.relu(jnp.dot(x, w1, precision=hi) + b1[0])
    h2 = jax.nn.relu(jnp.dot(h1, w2, precision=hi) + b2[0])
    return jnp.dot(h2, w3, precision=hi) + b3[0]


if __name__ == "__main__":
    # small synthetic config consistent with the module's forward
    bs, max_t, n_agents, obs_dim, hidden_dim = 2, 8, 4, 12, 32
    in_dim = obs_dim + FIXED_LEN

    key = jax.random.PRNGKey(0)
    k_obs, k_par = jax.random.split(key)
    obs = jax.random.normal(k_obs, (bs, max_t, n_agents, obs_dim), jnp.float32)
    params = init_params(k_par, in_dim, hidden_dim)
    prepared = prepare_ac_critic_params(params, n_agents=n_agents, obs_dim=obs_dim)

    q = jax.block_until_ready(ac_critic_forward(obs, prepared))
    ref = _reference(obs, params, n_agents)

    assert q.shape == (bs, max_t, n_agents, 1)
    # bf16 MXU operands vs a Precision.HIGHEST f32 reference -> loose tolerance.
    err = float(jnp.max(jnp.abs(q - ref)))
    assert jnp.allclose(q, ref, atol=5e-2, rtol=5e-2), err
    print("KERNEL_OK")
</pallas_src>

<mosaic_0001>
module attributes {stable_mosaic.version = 11 : i64} {
  func.func @_ac_critic_kernel(%arg0: i32, %arg1: memref<128x12xf32, #tpu.memory_space<vmem>>, %arg2: memref<12x128xbf16, #tpu.memory_space<vmem>>, %arg3: memref<128x128xf32, #tpu.memory_space<vmem>>, %arg4: memref<128x128xbf16, #tpu.memory_space<vmem>>, %arg5: memref<1x128xf32, #tpu.memory_space<vmem>>, %arg6: memref<1x128xf32, #tpu.memory_space<vmem>>, %arg7: memref<1x1xf32, #tpu.memory_space<smem>>, %arg8: memref<1x1x128xf32, #tpu.memory_space<vmem>>) attributes {dimension_semantics = [#tpu.dimension_semantics<parallel>], iteration_bounds = array<i64: 1>, scalar_prefetch = 0 : i64, scratch_operands = 0 : i64, tpu.core_type = #tpu.core_type<tc>, window_params = [{transform_indices = @transform_0, window_bounds = array<i64: 128, 12>}, {pipeline_mode = #tpu.pipeline_mode<synchronous>, transform_indices = @transform_1, window_bounds = array<i64: 12, 128>}, {pipeline_mode = #tpu.pipeline_mode<synchronous>, transform_indices = @transform_2, window_bounds = array<i64: 128, 128>}, {pipeline_mode = #tpu.pipeline_mode<synchronous>, transform_indices = @transform_3, window_bounds = array<i64: 128, 128>}, {pipeline_mode = #tpu.pipeline_mode<synchronous>, transform_indices = @transform_4, window_bounds = array<i64: 1, 128>}, {pipeline_mode = #tpu.pipeline_mode<synchronous>, transform_indices = @transform_5, window_bounds = array<i64: 1, 128>}, {transform_indices = @transform_6, window_bounds = array<i64: 1, 1>}, {transform_indices = @transform_7, window_bounds = array<i64: 1, 1, 128>}]} {
    %c0 = arith.constant 0 : index
    %c0_0 = arith.constant 0 : index
    %0 = vector.load %arg1[%c0, %c0_0] : memref<128x12xf32, #tpu.memory_space<vmem>>, vector<128x12xf32>
    %1 = arith.truncf %0 : vector<128x12xf32> to vector<128x12xbf16>
    %c0_1 = arith.constant 0 : index
    %c0_2 = arith.constant 0 : index
    %2 = vector.load %arg2[%c0_1, %c0_2] : memref<12x128xbf16, #tpu.memory_space<vmem>>, vector<12x128xbf16>
    %cst = arith.constant dense<0.000000e+00> : vector<128x128xf32>
    %3 = tpu.matmul %1, %2, %cst {dimension_numbers = #tpu.dot_dimension_numbers<[1], [0], [0], [1], [0, 0, 1, 1], [], []>} : vector<128x12xbf16>, vector<12x128xbf16>, vector<128x128xf32> -> vector<128x128xf32>
    %4 = vector.shape_cast %3 : vector<128x128xf32> to vector<1x128x128xf32>
    %c0_3 = arith.constant 0 : index
    %c0_4 = arith.constant 0 : index
    %5 = vector.load %arg3[%c0_3, %c0_4] : memref<128x128xf32, #tpu.memory_space<vmem>>, vector<128x128xf32>
    %6 = vector.shape_cast %5 : vector<128x128xf32> to vector<1x128x128xf32>
    %7 = arith.addf %4, %6 : vector<1x128x128xf32>
    %cst_5 = arith.constant 0.000000e+00 : f32
    %8 = vector.broadcast %cst_5 : f32 to vector<1x128x128xf32>
    %9 = arith.maximumf %7, %8 : vector<1x128x128xf32>
    %10 = vector.shape_cast %9 : vector<1x128x128xf32> to vector<128x128xf32>
    %11 = arith.truncf %10 : vector<128x128xf32> to vector<128x128xbf16>
    %c0_6 = arith.constant 0 : index
    %c0_7 = arith.constant 0 : index
    %12 = vector.load %arg4[%c0_6, %c0_7] : memref<128x128xbf16, #tpu.memory_space<vmem>>, vector<128x128xbf16>
    %cst_8 = arith.constant dense<0.000000e+00> : vector<128x128xf32>
    %13 = tpu.matmul %11, %12, %cst_8 {dimension_numbers = #tpu.dot_dimension_numbers<[1], [0], [0], [1], [0, 0, 1, 1], [], []>} : vector<128x128xbf16>, vector<128x128xbf16>, vector<128x128xf32> -> vector<128x128xf32>
    %c0_9 = arith.constant 0 : index
    %c0_10 = arith.constant 0 : index
    %14 = vector.load %arg5[%c0_9, %c0_10] : memref<1x128xf32, #tpu.memory_space<vmem>>, vector<1x128xf32>
    %15 = vector.broadcast %14 : vector<1x128xf32> to vector<128x128xf32>
    %16 = arith.addf %13, %15 : vector<128x128xf32>
    %cst_11 = arith.constant 0.000000e+00 : f32
    %17 = vector.broadcast %cst_11 : f32 to vector<128x128xf32>
    %18 = arith.maximumf %16, %17 : vector<128x128xf32>
    %c0_12 = arith.constant 0 : index
    %c0_13 = arith.constant 0 : index
    %19 = vector.load %arg6[%c0_12, %c0_13] : memref<1x128xf32, #tpu.memory_space<vmem>>, vector<1x128xf32>
    %cst_14 = arith.constant dense<0.000000e+00> : vector<1x128xf32>
    %20 = tpu.matmul %19, %18, %cst_14 {dimension_numbers = #tpu.dot_dimension_numbers<[1], [1], [0], [0], [0, 0, 1, 0], [], []>} : vector<1x128xf32>, vector<128x128xf32>, vector<1x128xf32> -> vector<1x128xf32>
    %c0_15 = arith.constant 0 : index
    %c0_16 = arith.constant 0 : index
    %21 = memref.load %arg7[%c0_15, %c0_16] : memref<1x1xf32, #tpu.memory_space<smem>>
    %22 = vector.broadcast %21 : f32 to vector<1x128xf32>
    %23 = arith.addf %20, %22 : vector<1x128xf32>
    %c0_17 = arith.constant 0 : index
    %c0_18 = arith.constant 0 : index
    %c0_19 = arith.constant 0 : index
    %24 = vector.load %arg8[%c0_17, %c0_18, %c0_19] : memref<1x1x128xf32, #tpu.memory_space<vmem>>, vector<1x1x128xf32>
    %25 = vector.shape_cast %24 : vector<1x1x128xf32> to vector<1x128xf32>
    %26 = vector.shape_cast %23 : vector<1x128xf32> to vector<1x1x128xf32>
    tpu.vector_store %arg8[%c0_17, %c0_18, %c0_19], %26 {strides = array<i32>} : memref<1x1x128xf32, #tpu.memory_space<vmem>>, vector<1x1x128xf32>,
    return
  }
  func.func @transform_0(%arg0: i32) -> (i32, i32) {
    %c0_i32 = arith.constant 0 : i32
    %c0_i32_0 = arith.constant 0 : i32
    return %arg0, %c0_i32 : i32, i32
  }
  func.func @transform_1(%arg0: i32) -> (i32, i32) {
    %c0_i32 = arith.constant 0 : i32
    %c0_i32_0 = arith.constant 0 : i32
    %c0_i32_1 = arith.constant 0 : i32
    return %c0_i32, %c0_i32_0 : i32, i32
  }
  func.func @transform_2(%arg0: i32) -> (i32, i32) {
    %c0_i32 = arith.constant 0 : i32
    %c0_i32_0 = arith.constant 0 : i32
    %c0_i32_1 = arith.constant 0 : i32
    return %c0_i32, %c0_i32_0 : i32, i32
  }
  func.func @transform_3(%arg0: i32) -> (i32, i32) {
    %c0_i32 = arith.constant 0 : i32
    %c0_i32_0 = arith.constant 0 : i32
    %c0_i32_1 = arith.constant 0 : i32
    return %c0_i32, %c0_i32_0 : i32, i32
  }
  func.func @transform_4(%arg0: i32) -> (i32, i32) {
    %c0_i32 = arith.constant 0 : i32
    %c0_i32_0 = arith.constant 0 : i32
    %c0_i32_1 = arith.constant 0 : i32
    return %c0_i32, %c0_i32_0 : i32, i32
  }
  func.func @transform_5(%arg0: i32) -> (i32, i32) {
    %c0_i32 = arith.constant 0 : i32
    %c0_i32_0 = arith.constant 0 : i32
    %c0_i32_1 = arith.constant 0 : i32
    return %c0_i32, %c0_i32_0 : i32, i32
  }
  func.func @transform_6(%arg0: i32) -> (i32, i32) {
    %c0_i32 = arith.constant 0 : i32
    %c0_i32_0 = arith.constant 0 : i32
    %c0_i32_1 = arith.constant 0 : i32
    return %c0_i32, %c0_i32_0 : i32, i32
  }
  func.func @transform_7(%arg0: i32) -> (i32, i32, i32) {
    %c0_i32 = arith.constant 0 : i32
    %c0_i32_0 = arith.constant 0 : i32
    %c0_i32_1 = arith.constant 0 : i32
    return %arg0, %c0_i32, %c0_i32_0 : i32, i32, i32
  }
}

module attributes {stable_mosaic.version = 11 : i64} {
  func.func @_ac_critic_kernel(%arg0: i32, %arg1: memref<128x12xf32, #tpu.memory_space<vmem>>, %arg2: memref<12x128xbf16, #tpu.memory_space<vmem>>, %arg3: memref<128x128xf32, #tpu.memory_space<vmem>>, %arg4: memref<128x128xbf16, #tpu.memory_space<vmem>>, %arg5: memref<1x128xf32, #tpu.memory_space<vmem>>, %arg6: memref<1x128xf32, #tpu.memory_space<vmem>>, %arg7: memref<1x1xf32, #tpu.memory_space<smem>>, %arg8: memref<1x1x128xf32, #tpu.memory_space<vmem>>) attributes {dimension_semantics = [#tpu.dimension_semantics<parallel>], iteration_bounds = array<i64: 1>, scalar_prefetch = 0 : i64, scratch_operands = 0 : i64, tpu.core_type = #tpu.core_type<tc>, window_params = [{transform_indices = @transform_0, window_bounds = array<i64: 128, 12>}, {pipeline_mode = #tpu.pipeline_mode<synchronous>, transform_indices = @transform_1, window_bounds = array<i64: 12, 128>}, {pipeline_mode = #tpu.pipeline_mode<synchronous>, transform_indices = @transform_2, window_bounds = array<i64: 128, 128>}, {pipeline_mode = #tpu.pipeline_mode<synchronous>, transform_indices = @transform_3, window_bounds = array<i64: 128, 128>}, {pipeline_mode = #tpu.pipeline_mode<synchronous>, transform_indices = @transform_4, window_bounds = array<i64: 1, 128>}, {pipeline_mode = #tpu.pipeline_mode<synchronous>, transform_indices = @transform_5, window_bounds = array<i64: 1, 128>}, {transform_indices = @transform_6, window_bounds = array<i64: 1, 1>}, {transform_indices = @transform_7, window_bounds = array<i64: 1, 1, 128>}]} {
    %c0 = arith.constant 0 : index
    %c0_0 = arith.constant 0 : index
    %0 = vector.load %arg1[%c0, %c0_0] : memref<128x12xf32, #tpu.memory_space<vmem>>, vector<128x12xf32>
    %1 = arith.truncf %0 : vector<128x12xf32> to vector<128x12xbf16>
    %c0_1 = arith.constant 0 : index
    %c0_2 = arith.constant 0 : index
    %2 = vector.load %arg2[%c0_1, %c0_2] : memref<12x128xbf16, #tpu.memory_space<vmem>>, vector<12x128xbf16>
    %cst = arith.constant dense<0.000000e+00> : vector<128x128xf32>
    %3 = tpu.matmul %1, %2, %cst {dimension_numbers = #tpu.dot_dimension_numbers<[1], [0], [0], [1], [0, 0, 1, 1], [], []>} : vector<128x12xbf16>, vector<12x128xbf16>, vector<128x128xf32> -> vector<128x128xf32>
    %4 = vector.shape_cast %3 : vector<128x128xf32> to vector<1x128x128xf32>
    %c0_3 = arith.constant 0 : index
    %c0_4 = arith.constant 0 : index
    %5 = vector.load %arg3[%c0_3, %c0_4] : memref<128x128xf32, #tpu.memory_space<vmem>>, vector<128x128xf32>
    %6 = vector.shape_cast %5 : vector<128x128xf32> to vector<1x128x128xf32>
    %7 = arith.addf %4, %6 : vector<1x128x128xf32>
    %cst_5 = arith.constant 0.000000e+00 : f32
    %8 = vector.broadcast %cst_5 : f32 to vector<1x128x128xf32>
    %9 = arith.maximumf %7, %8 : vector<1x128x128xf32>
    %10 = vector.shape_cast %9 : vector<1x128x128xf32> to vector<128x128xf32>
    %11 = arith.truncf %10 : vector<128x128xf32> to vector<128x128xbf16>
    %c0_6 = arith.constant 0 : index
    %c0_7 = arith.constant 0 : index
    %12 = vector.load %arg4[%c0_6, %c0_7] : memref<128x128xbf16, #tpu.memory_space<vmem>>, vector<128x128xbf16>
    %cst_8 = arith.constant dense<0.000000e+00> : vector<128x128xf32>
    %13 = tpu.matmul %11, %12, %cst_8 {dimension_numbers = #tpu.dot_dimension_numbers<[1], [0], [0], [1], [0, 0, 1, 1], [], []>} : vector<128x128xbf16>, vector<128x128xbf16>, vector<128x128xf32> -> vector<128x128xf32>
    %c0_9 = arith.constant 0 : index
    %c0_10 = arith.constant 0 : index
    %14 = vector.load %arg5[%c0_9, %c0_10] : memref<1x128xf32, #tpu.memory_space<vmem>>, vector<1x128xf32>
    %15 = vector.broadcast %14 : vector<1x128xf32> to vector<128x128xf32>
    %16 = arith.addf %13, %15 : vector<128x128xf32>
    %cst_11 = arith.constant 0.000000e+00 : f32
    %17 = vector.broadcast %cst_11 : f32 to vector<128x128xf32>
    %18 = arith.maximumf %16, %17 : vector<128x128xf32>
    %c0_12 = arith.constant 0 : index
    %c0_13 = arith.constant 0 : index
    %19 = vector.load %arg6[%c0_12, %c0_13] : memref<1x128xf32, #tpu.memory_space<vmem>>, vector<1x128xf32>
    %cst_14 = arith.constant dense<0.000000e+00> : vector<1x128xf32>
    %20 = tpu.matmul %19, %18, %cst_14 {dimension_numbers = #tpu.dot_dimension_numbers<[1], [1], [0], [0], [0, 0, 1, 0], [], []>} : vector<1x128xf32>, vector<128x128xf32>, vector<1x128xf32> -> vector<1x128xf32>
    %c0_15 = arith.constant 0 : index
    %c0_16 = arith.constant 0 : index
    %21 = memref.load %arg7[%c0_15, %c0_16] : memref<1x1xf32, #tpu.memory_space<smem>>
    %22 = vector.broadcast %21 : f32 to vector<1x128xf32>
    %23 = arith.addf %20, %22 : vector<1x128xf32>
    %c0_17 = arith.constant 0 : index
    %c0_18 = arith.constant 0 : index
    %c0_19 = arith.constant 0 : index
    %24 = vector.load %arg8[%c0_17, %c0_18, %c0_19] : memref<1x1x128xf32, #tpu.memory_space<vmem>>, vector<1x1x128xf32>
    %25 = vector.shape_cast %24 : vector<1x1x128xf32> to vector<1x128xf32>
    %26 = vector.shape_cast %23 : vector<1x128xf32> to vector<1x1x128xf32>
    tpu.vector_store %arg8[%c0_17, %c0_18, %c0_19], %26 {strides = array<i32>} : memref<1x1x128xf32, #tpu.memory_space<vmem>>, vector<1x1x128xf32>,
    return
  }
  func.func @transform_0(%arg0: i32) -> (i32, i32) {
    %c0_i32 = arith.constant 0 : i32
    %c0_i32_0 = arith.constant 0 : i32
    return %arg0, %c0_i32 : i32, i32
  }
  func.func @transform_1(%arg0: i32) -> (i32, i32) {
    %c0_i32 = arith.constant 0 : i32
    %c0_i32_0 = arith.constant 0 : i32
    %c0_i32_1 = arith.constant 0 : i32
    return %c0_i32, %c0_i32_0 : i32, i32
  }
  func.func @transform_2(%arg0: i32) -> (i32, i32) {
    %c0_i32 = arith.constant 0 : i32
    %c0_i32_0 = arith.constant 0 : i32
    %c0_i32_1 = arith.constant 0 : i32
    return %c0_i32, %c0_i32_0 : i32, i32
  }
  func.func @transform_3(%arg0: i32) -> (i32, i32) {
    %c0_i32 = arith.constant 0 : i32
    %c0_i32_0 = arith.constant 0 : i32
    %c0_i32_1 = arith.constant 0 : i32
    return %c0_i32, %c0_i32_0 : i32, i32
  }
  func.func @transform_4(%arg0: i32) -> (i32, i32) {
    %c0_i32 = arith.constant 0 : i32
    %c0_i32_0 = arith.constant 0 : i32
    %c0_i32_1 = arith.constant 0 : i32
    return %c0_i32, %c0_i32_0 : i32, i32
  }
  func.func @transform_5(%arg0: i32) -> (i32, i32) {
    %c0_i32 = arith.constant 0 : i32
    %c0_i32_0 = arith.constant 0 : i32
    %c0_i32_1 = arith.constant 0 : i32
    return %c0_i32, %c0_i32_0 : i32, i32
  }
  func.func @transform_6(%arg0: i32) -> (i32, i32) {
    %c0_i32 = arith.constant 0 : i32
    %c0_i32_0 = arith.constant 0 : i32
    %c0_i32_1 = arith.constant 0 : i32
    return %c0_i32, %c0_i32_0 : i32, i32
  }
  func.func @transform_7(%arg0: i32) -> (i32, i32, i32) {
    %c0_i32 = arith.constant 0 : i32
    %c0_i32_0 = arith.constant 0 : i32
    %c0_i32_1 = arith.constant 0 : i32
    return %arg0, %c0_i32, %c0_i32_0 : i32, i32, i32
  }
}

</mosaic_0001>

<bundles_post_ra>
// kernel: tpu_custom_call.1
= control target key start
LH: loop header
LB: loop body
LE: loop exit
PB: predicated region body
PF: predicated region fallthrough
CT: control target
= control target key end

     0   :  { %13 = vsyncpa [#allocation4], 0  ;;  %s928_s0 = inlined_call_operand.vmem [shape: f32[128,12], index: 0, kind: input, shape index: {}]   ;;  %s929_s1 = inlined_call_operand.vmem [shape: bf16[12,128], index: 1, kind: input, shape index: {}]   ;;  %s930_s2 = inlined_call_operand.vmem [shape: f32[128,128], index: 2, kind: input, shape index: {}]   ;;  %s931_s3 = inlined_call_operand.hbm [shape: bf16[128,128], index: 3, kind: input, shape index: {}]   ;;  %s932_s4 = inlined_call_operand.vmem [shape: f32[1,128], index: 4, kind: input, shape index: {}]   ;;  %s933_s5 = inlined_call_operand.vmem [shape: f32[1,128], index: 5, kind: input, shape index: {}]   ;;  %s934_s6 = inlined_call_operand.<no memory space> [shape: f32[1,1], index: 6, kind: input, shape index: {}]   ;;  %s935_s7 = inlined_call_operand.hbm [shape: f32[1,1,128], index: 7, kind: output, shape index: {}]  }
   0x1   :  { %14 = vsyncpa [#allocation5], 0  ;;  %s734_s24 = smov [#allocation3]  }
   0x2   :  { %s26_s25 = sshll.u32 %s734_s24, 4  ;;  %s27_s25 = int_to_ptr.vmem [resolvable:$true] %s26_s25 }
   0x3   :  { %s698_s26 = scalar_lea.vmem %s27_s25, 1024  ;;  %p703_p1 = scmp.lt.s32.totalorder %s27_s25, %s27_s25 }
   0x4   :  { %p699_p0 = scmp.ne.s32.totalorder %s27_s25, %s698_s26  ;;  %p704_p2 = scmp.lt.s32.totalorder %s698_s26, %s698_s26 }
   0x6   :  { %p705_p3 = por %p704_p2, %p703_p1 }
   0x8   :  { %p706_p4 = pnand %p705_p3, %p699_p0 }
   0xa   :  { %709 = shalt.err (!%p706_p4)
}
   0xb   :  { %s735_s27 = smov 64   ;;  %s736_s28 = smov 4  }
   0xc   :  { %32 = dma.hbm_to_vmem [thread:$0]  %s931_s3, 1024, %s27_s25, [#allocation4], %s735_s27, %s735_s27, %s736_s28  }
   0xd   :  { %730 = dma.done.wait [#allocation4], 1024  }
   0xe   :  { %731 = vsyncadd [#allocation4], 4294966272  ;;  %vm99_vm0 = vcmask 1045504   ;;  %v681_v0 = vld [vmem:[%s929_s1] sm:$0x3f]   ;;  %v44_v2 = vld [vmem:[%s928_s0 + $0x8] sm:$0xff] }
   0xf   :  { %v43_v1 = vld [vmem:[%s928_s0] sm:$0xff]  ;;  %vm74_vm1 = vcmask 97280   ;;  %v45_v3 = vld [vmem:[%s928_s0 + $0x10] sm:$0xff]  ;;  %674 = vmatprep.subr.msk.bf16.mxu1 %vm99_vm0, %v681_v0  ;;  %v101_v4 = vsel %vm99_vm0, %v681_v0, 0  ;;  %v46_v6 = vld [vmem:[%s928_s0 + $0x18] sm:$0xff]  ;;  %vm738_vm2 = vmmov 0  }
  0x10   :  { %v59_v5 = vpack.c.bf16 %v44_v2, %v43_v1  ;;  %v47_v7 = vld [vmem:[%s928_s0 + $0x20] sm:$0xff]  ;;  %v48_v8 = vld [vmem:[%s928_s0 + $0x28] sm:$0xff]  ;;  %590 = vmatpush3.bf16.msra.mxu1 %v101_v4  ;;  %v60_v9 = vpack.c.bf16 %v46_v6, %v45_v3  ;;  %v49_v11 = vld [vmem:[%s928_s0 + $0x30] sm:$0xff]  ;;  %s739_s24 = smov [#allocation6]  }
  0x11   :  { %v61_v10 = vpack.c.bf16 %v48_v8, %v47_v7  ;;  %v50_v12 = vld [vmem:[%s928_s0 + $0x38] sm:$0xff]  ;;  %v51_v13 = vld [vmem:[%s928_s0 + $0x40] sm:$0xff]  ;;  %v52_v14 = vld [vmem:[%s928_s0 + $0x48] sm:$0xff]  ;;  %s520_s25 = sshll.u32 %s739_s24, 4  ;;  %s521_s25 = int_to_ptr.vmem [resolvable:$true] %s520_s25 }
  0x12   :  { %591 = vmatprep.mubr.msk.bf16.mxu1 %vm74_vm1, %v59_v5  ;;  %v682_v15 = vld [vmem:[#allocation3 + $0x38] sm:$0xff]   ;;  %v683_v16 = vld [vmem:[#allocation3 + $0x30] sm:$0xff]   ;;  %v62_v17 = vpack.c.bf16 %v50_v12, %v49_v11  ;;  %v63_v18 = vpack.c.bf16 %v52_v14, %v51_v13  ;;  %v684_v19 = vld [vmem:[#allocation3 + $0x28] sm:$0xff]   ;;  %s710_s26 = scalar_lea.vmem %s521_s25, 16  ;;  %s714_s27 = scalar_lea.vmem %s521_s25, 32 }
  0x13   :  { %592 = vmatmul.mubr.msk.bf16.vlgmr.msra.gmra.mxu1 %vm74_vm1, %v60_v9  ;;  %607 = vmatprep.subr.bf16.mxu1 %v682_v15  ;;  %v53_v20 = vld [vmem:[%s928_s0 + $0x50] sm:$0xff]  ;;  %v54_v21 = vld [vmem:[%s928_s0 + $0x58] sm:$0xff]  ;;  %v55_v22 = vld [vmem:[%s928_s0 + $0x60] sm:$0xff]  ;;  %p711_p5 = scmp.ne.s32.totalorder %s521_s25, %s710_s26  ;;  %p715_p6 = scmp.lt.s32.totalorder %s521_s25, %s521_s25 }
  0x14   :  { %595 = vmatprep.mubr.msk.bf16.mxu1 %vm74_vm1, %v61_v10  ;;  %608 = vmatpush3.bf16.msra.mxu1 %v682_v15  ;;  %v56_v23 = vld [vmem:[%s928_s0 + $0x68] sm:$0xff]  ;;  %v685_v24 = vld [vmem:[#allocation3 + $0x20] sm:$0xff]   ;;  %v64_v25 = vpack.c.bf16 %v54_v21, %v53_v20  ;;  %v686_v27 = vld [vmem:[#allocation3 + $0x18] sm:$0xff]   ;;  %p716_p7 = scmp.lt.s32.totalorder %s714_s27, %s710_s26 }
  0x15   :  { %609 = vmatprep.subr.bf16.mxu1 %v683_v16  ;;  %v65_v26 = vpack.c.bf16 %v56_v23, %v55_v22  ;;  %v57_v28 = vld [vmem:[%s928_s0 + $0x70] sm:$0xff]  ;;  %v58_v29 = vld [vmem:[%s928_s0 + $0x78] sm:$0xff]  ;;  %v688_v32 = vld [vmem:[#allocation3 + $0x8] sm:$0xff]  }
  0x16   :  { %v66_v30 = vpack.c.bf16 %v58_v29, %v57_v28  ;;  %v687_v31 = vld [vmem:[#allocation3 + $0x10] sm:$0xff]   ;;  %v689_v33 = vld [vmem:[#allocation3] sm:$0xff]   ;;  %v203_v37 = vld [vmem:[%s930_s2 + $0x18] sm:$0xff]  ;;  %p717_p8 = por %p716_p7, %p715_p6 }
  0x17   :  { %v200_v36 = vld [vmem:[%s930_s2] sm:$0xff]  ;;  %v202_v38 = vld [vmem:[%s930_s2 + $0x10] sm:$0xff]  ;;  %v201_v40 = vld [vmem:[%s930_s2 + $0x8] sm:$0xff] }
  0x18   :  { %610 = vmatpush3.bf16.msra.mxu1 %v683_v16  ;;  %v204_v52 = vld [vmem:[%s930_s2 + $0x20] sm:$0xff]  ;;  %v207_v53 = vld [vmem:[%s930_s2 + $0x38] sm:$0xff]  ;;  %v206_v55 = vld [vmem:[%s930_s2 + $0x30] sm:$0xff]  ;;  %p718_p9 = pnand %p717_p8, %p711_p5 }
  0x19   :  { %611 = vmatprep.subr.bf16.mxu1 %v684_v19  ;;  %v205_v58 = vld [vmem:[%s930_s2 + $0x28] sm:$0xff]  ;;  %v208_v6 = vld [vmem:[%s930_s2 + $0x40] sm:$0xff]  ;;  %v211_v7 = vld [vmem:[%s930_s2 + $0x58] sm:$0xff] }
  0x1a   :  { %v210_v9 = vld [vmem:[%s930_s2 + $0x50] sm:$0xff]  ;;  %v209_v12 = vld [vmem:[%s930_s2 + $0x48] sm:$0xff] }
  0x1b   :  { %596 = vmatmul.mubr.msk.bf16.gmra.mxu1 %vm74_vm1, %v62_v17 }
  0x1c   :  { %599 = vmatprep.mubr.msk.bf16.mxu1 %vm74_vm1, %v63_v18  ;;  %612 = vmatpush3.bf16.msra.mxu1 %v684_v19 }
  0x1d   :  { %613 = vmatprep.subr.bf16.mxu1 %v685_v24 }
  0x20   :  { %614 = vmatpush3.bf16.msra.mxu1 %v685_v24  ;;  %v212_v24 = vld [vmem:[%s930_s2 + $0x60] sm:$0xff] }
  0x21   :  { %615 = vmatprep.subr.bf16.mxu1 %v686_v27 }
  0x23   :  { %600 = vmatmul.mubr.msk.bf16.gmra.mxu1 %vm74_vm1, %v64_v25  ;;  %v215_v25 = vld [vmem:[%s930_s2 + $0x78] sm:$0xff] }
  0x24   :  { %603 = vmatprep.mubr.msk.bf16.mxu1 %vm74_vm1, %v65_v26  ;;  %616 = vmatpush3.bf16.msra.mxu1 %v686_v27  ;;  %v214_v27 = vld [vmem:[%s930_s2 + $0x70] sm:$0xff] }
  0x25   :  { %617 = vmatprep.subr.bf16.mxu1 %v687_v31 }
  0x28   :  { %618 = vmatpush3.bf16.msra.mxu1 %v687_v31 }
  0x29   :  { %619 = vmatprep.subr.bf16.mxu1 %v688_v32 }
  0x2b   :  { %604 = vmatmul.mubr.msk.bf16.gmra.mxu1 %vm74_vm1, %v66_v30  ;;  %v213_v30 = vld [vmem:[%s930_s2 + $0x68] sm:$0xff] }
  0x2c   :  { %620 = vmatpush3.bf16.msra.mxu1 %v688_v32 }
  0x2d   :  { %621 = vmatprep.subr.bf16.mxu1 %v689_v33 }
  0x30   :  { %622 = vmatpush3.bf16.msra.mxu1 %v689_v33 }
  0xd3   :  { %v593_v34 = vpop.f32.mrf.mxu1 }
  0xd4   :  { %v218_v43 = vadd.f32 %v593_v34, %v202_v38 }
  0xd5   :  { %v137_v35 = vpop.f32.mrf.mxu1 }
  0xd6   :  { %v216_v41 = vadd.f32 %v200_v36, %v137_v35  ;;  %v234_v50 = vmax.f32 %v218_v43, 0.0 }
  0xd7   :  { %v594_v39 = vpop.f32.mrf.mxu1 }
  0xd8   :  { %v219_v42 = vadd.f32 %v594_v39, %v203_v37  ;;  %v232_v48 = vmax.f32 %v216_v41, 0.0 }
  0xd9   :  { %v140_v44 = vpop.f32.mrf.mxu1 }
  0xda   :  { %v217_v45 = vadd.f32 %v201_v40, %v140_v44  ;;  %v235_v46 = vmax.f32 %v219_v42, 0.0  ;;  %v737_v42 = vmov 0.0  }
  0xdb   :  { %v597_v47 = vpop.f32.mrf.mxu1  ;;  %639 = vmatprep.subr.mxu0 %v737_v42  ;;  %671 = vmatprep.mubr.msk.f32.mxu0 %vm738_vm2, %v737_v42 }
  0xdc   :  { %v233_v49 = vmax.f32 %v217_v45, 0.0  ;;  %v249_v56 = vpack.c.bf16 %v235_v46, %v234_v50  ;;  %v222_v61 = vadd.f32 %v597_v47, %v206_v55 }
  0xdd   :  { %v153_v51 = vpop.f32.mrf.mxu1 }
  0xde   :  { %v248_v54 = vpack.c.bf16 %v233_v49, %v232_v48  ;;  %v220_v59 = vadd.f32 %v204_v52, %v153_v51  ;;  %v238_v4 = vmax.f32 %v222_v61, 0.0 }
  0xdf   :  { %v598_v57 = vpop.f32.mrf.mxu1 }
  0xe0   :  { %v223_v60 = vadd.f32 %v598_v57, %v207_v53  ;;  %623 = vmatprep.mubr.bf16.mxu1 %v248_v54  ;;  %v236_v2 = vmax.f32 %v220_v59, 0.0  ;;  %v538_v57 = vld [vmem:[%s932_s4] ss:$0 sm:$0xff] }
  0xe1   :  { %v156_v62 = vpop.f32.mrf.mxu1  ;;  %624 = vmatmul.mubr.bf16.vlgmr.msra.gmra.mxu1 %v249_v56 }
  0xe2   :  { %v221_v63 = vadd.f32 %v205_v58, %v156_v62  ;;  %v239_v0 = vmax.f32 %v223_v60, 0.0 }
  0xe3   :  { %v601_v1 = vpop.f32.mrf.mxu1 }
  0xe4   :  { %v237_v3 = vmax.f32 %v221_v63, 0.0  ;;  %v251_v10 = vpack.c.bf16 %v239_v0, %v238_v4  ;;  %v226_v15 = vadd.f32 %v601_v1, %v210_v9 }
  0xe5   :  { %v169_v5 = vpop.f32.mrf.mxu1 }
  0xe6   :  { %v250_v8 = vpack.c.bf16 %v237_v3, %v236_v2  ;;  %v224_v13 = vadd.f32 %v208_v6, %v169_v5  ;;  %v242_v22 = vmax.f32 %v226_v15, 0.0 }
  0xe7   :  { %v602_v11 = vpop.f32.mrf.mxu1 }
  0xe8   :  { %v227_v14 = vadd.f32 %v602_v11, %v211_v7  ;;  %627 = vmatprep.mubr.bf16.mxu1 %v250_v8  ;;  %v240_v20 = vmax.f32 %v224_v13, 0.0 }
  0xe9   :  { %v172_v16 = vpop.f32.mrf.mxu1  ;;  %628 = vmatmul.mubr.bf16.gmra.mxu1 %v251_v10 }
  0xea   :  { %v225_v17 = vadd.f32 %v209_v12, %v172_v16  ;;  %v243_v18 = vmax.f32 %v227_v14, 0.0 }
  0xeb   :  { %v605_v19 = vpop.f32.mrf.mxu1 }
  0xec   :  { %v241_v21 = vmax.f32 %v225_v17, 0.0  ;;  %v253_v28 = vpack.c.bf16 %v243_v18, %v242_v22  ;;  %v230_v33 = vadd.f32 %v605_v19, %v214_v27 }
  0xed   :  { %v185_v23 = vpop.f32.mrf.mxu1 }
  0xee   :  { %v252_v26 = vpack.c.bf16 %v241_v21, %v240_v20  ;;  %v228_v31 = vadd.f32 %v212_v24, %v185_v23  ;;  %v246_v39 = vmax.f32 %v230_v33, 0.0 }
  0xef   :  { %v606_v29 = vpop.f32.mrf.mxu1 }
  0xf0   :  { %v231_v32 = vadd.f32 %v606_v29, %v215_v25  ;;  %631 = vmatprep.mubr.bf16.mxu1 %v252_v26  ;;  %v244_v37 = vmax.f32 %v228_v31, 0.0  ;;  %v442_v29 = vstv %s934_s6 }
  0xf1   :  { %v188_v34 = vpop.f32.mrf.mxu1  ;;  %632 = vmatmul.mubr.bf16.gmra.mxu1 %v253_v28  ;;  %v440_v28 = vld [vmem:[%s933_s5] sm:$0x1] }
  0xf2   :  { %v229_v35 = vadd.f32 %v213_v30, %v188_v34  ;;  %v247_v36 = vmax.f32 %v231_v32, 0.0 }
  0xf4   :  { %v245_v38 = vmax.f32 %v229_v35, 0.0  ;;  %v255_v41 = vpack.c.bf16 %v247_v36, %v246_v39 }
  0xf6   :  { %v254_v40 = vpack.c.bf16 %v245_v38, %v244_v37 }
  0xf8   :  { %635 = vmatprep.mubr.bf16.mxu1 %v254_v40 }
  0xf9   :  { %636 = vmatmul.mubr.bf16.gmra.mxu1 %v255_v41 }
 0x1a1   :  { %v892_v43 = vpop.f32.mrf.mxu1 }
 0x1a2   :  { %v370_v21 = vadd.f32 %v892_v43, %v538_v57 }
 0x1a3   :  { %v894_v44 = vpop.f32.mrf.mxu1 }
 0x1a4   :  { %v426_v23 = vmax.f32 %v370_v21, 0.0  ;;  %v362_v25 = vadd.f32 %v538_v57, %v894_v44 }
 0x1a5   :  { %v626_v45 = vpop.f32.mrf.mxu1 }
 0x1a6   :  { %v373_v19 = vadd.f32 %v626_v45, %v538_v57  ;;  %v424_v27 = vmax.f32 %v362_v25, 0.0 }
 0x1a7   :  { %v896_v46 = vpop.f32.mrf.mxu1 }
 0x1a8   :  { %v427_v22 = vmax.f32 %v373_v19, 0.0  ;;  %v365_v24 = vadd.f32 %v538_v57, %v896_v46 }
 0x1a9   :  { %v629_v47 = vpop.f32.mrf.mxu1 }
 0x1aa   :  { %v386_v13 = vadd.f32 %v629_v47, %v538_v57  ;;  %v425_v26 = vmax.f32 %v365_v24, 0.0 }
 0x1ab   :  { %v377_v48 = vpop.f32.mrf.mxu1 }
 0x1ac   :  { %v430_v15 = vmax.f32 %v386_v13, 0.0  ;;  %v378_v17 = vadd.f32 %v538_v57, %v377_v48 }
 0x1ad   :  { %v630_v49 = vpop.f32.mrf.mxu1 }
 0x1ae   :  { %v389_v11 = vadd.f32 %v630_v49, %v538_v57  ;;  %v428_v20 = vmax.f32 %v378_v17, 0.0 }
 0x1af   :  { %v380_v50 = vpop.f32.mrf.mxu1 }
 0x1b0   :  { %v431_v14 = vmax.f32 %v389_v11, 0.0  ;;  %v381_v16 = vadd.f32 %v538_v57, %v380_v50 }
 0x1b1   :  { %v633_v51 = vpop.f32.mrf.mxu1 }
 0x1b2   :  { %v402_v5 = vadd.f32 %v633_v51, %v538_v57  ;;  %v429_v18 = vmax.f32 %v381_v16, 0.0 }
 0x1b3   :  { %v393_v52 = vpop.f32.mrf.mxu1 }
 0x1b4   :  { %v434_v7 = vmax.f32 %v402_v5, 0.0  ;;  %v394_v9 = vadd.f32 %v538_v57, %v393_v52 }
 0x1b5   :  { %v634_v53 = vpop.f32.mrf.mxu1 }
 0x1b6   :  { %v405_v3 = vadd.f32 %v634_v53, %v538_v57  ;;  %v432_v12 = vmax.f32 %v394_v9, 0.0 }
 0x1b7   :  { %v396_v54 = vpop.f32.mrf.mxu1 }
 0x1b8   :  { %v435_v6 = vmax.f32 %v405_v3, 0.0  ;;  %v397_v8 = vadd.f32 %v538_v57, %v396_v54 }
 0x1b9   :  { %v637_v55 = vpop.f32.mrf.mxu1 }
 0x1ba   :  { %v418_v60 = vadd.f32 %v637_v55, %v538_v57  ;;  %v433_v10 = vmax.f32 %v397_v8, 0.0 }
 0x1bb   :  { %v409_v56 = vpop.f32.mrf.mxu1 }
 0x1bc   :  { %v438_v63 = vmax.f32 %v418_v60, 0.0  ;;  %v410_v1 = vadd.f32 %v538_v57, %v409_v56 }
 0x1bd   :  { %v638_v58 = vpop.f32.mrf.mxu1 }
 0x1be   :  { %v421_v59 = vadd.f32 %v638_v58, %v538_v57  ;;  %v436_v4 = vmax.f32 %v410_v1, 0.0 }
 0x1bf   :  { %v412_v62 = vpop.f32.mrf.mxu1 }
 0x1c0   :  { %v439_v61 = vmax.f32 %v421_v59, 0.0  ;;  %v413_v0 = vadd.f32 %v538_v57, %v412_v62 }
 0x1c2   :  { %640 = vmatpush3.xpose.msra.mxu0 %v439_v61  ;;  %v437_v2 = vmax.f32 %v413_v0, 0.0 }
 0x1c3   :  { %641 = vmatprep.subr.mxu0 %v737_v42 }
 0x1c6   :  { %642 = vmatpush3.xpose.msra.mxu0 %v438_v63 }
 0x1c7   :  { %643 = vmatprep.subr.mxu0 %v737_v42 }
 0x1ca   :  { %644 = vmatpush3.xpose.msra.mxu0 %v437_v2 }
 0x1cb   :  { %645 = vmatprep.subr.mxu0 %v737_v42 }
 0x1ce   :  { %646 = vmatpush3.xpose.msra.mxu0 %v436_v4 }
 0x1cf   :  { %647 = vmatprep.subr.mxu0 %v737_v42 }
 0x1d2   :  { %648 = vmatpush3.xpose.msra.mxu0 %v435_v6 }
 0x1d3   :  { %649 = vmatprep.subr.mxu0 %v737_v42 }
 0x1d6   :  { %650 = vmatpush3.xpose.msra.mxu0 %v434_v7 }
 0x1d7   :  { %651 = vmatprep.subr.mxu0 %v737_v42 }
 0x1da   :  { %652 = vmatpush3.xpose.msra.mxu0 %v433_v10 }
 0x1db   :  { %653 = vmatprep.subr.mxu0 %v737_v42 }
 0x1de   :  { %654 = vmatpush3.xpose.msra.mxu0 %v432_v12 }
 0x1df   :  { %655 = vmatprep.subr.mxu0 %v737_v42 }
 0x1e2   :  { %656 = vmatpush3.xpose.msra.mxu0 %v431_v14 }
 0x1e3   :  { %657 = vmatprep.subr.mxu0 %v737_v42 }
 0x1e6   :  { %658 = vmatpush3.xpose.msra.mxu0 %v430_v15 }
 0x1e7   :  { %659 = vmatprep.subr.mxu0 %v737_v42 }
 0x1ea   :  { %660 = vmatpush3.xpose.msra.mxu0 %v429_v18 }
 0x1eb   :  { %661 = vmatprep.subr.mxu0 %v737_v42 }
 0x1ee   :  { %662 = vmatpush3.xpose.msra.mxu0 %v428_v20 }
 0x1ef   :  { %663 = vmatprep.subr.mxu0 %v737_v42 }
 0x1f2   :  { %664 = vmatpush3.xpose.msra.mxu0 %v427_v22 }
 0x1f3   :  { %665 = vmatprep.subr.mxu0 %v737_v42 }
 0x1f6   :  { %666 = vmatpush3.xpose.msra.mxu0 %v426_v23 }
 0x1f7   :  { %667 = vmatprep.subr.mxu0 %v737_v42 }
 0x1fa   :  { %668 = vmatpush3.xpose.msra.mxu0 %v425_v26 }
 0x1fb   :  { %669 = vmatprep.subr.mxu0 %v737_v42 }
 0x1fe   :  { %670 = vmatpush3.xpose.msra.mxu0 %v424_v27 }
 0x201   :  { %672 = vmatmul.mubr.f32.vlgmr.msra.gmra.mxu0 %v440_v28 }
 0x2c1   :  { %v509_v30 = vpop.f32.mrf.mxu0 }
 0x2c2   :  { %v510_v31 = vadd.f32 %v509_v30, %v442_v29 }
 0x2c3   :  { %v673_v32 = vpop.f32.mrf.mxu0 }
 0x2c4   :  { %513 = vst [vmem:[#allocation6] sm:$0x1] %v510_v31 }
 0x2c5   :  { %721 = shalt.err (!%p718_p9)
}
 0x2c6   :  { %523 = dma.vmem_to_hbm [thread:$0]  %s521_s25, 16, %s935_s7, [#allocation5]  }
 0x2c7   :  { %732 = dma.done.wait [#allocation5], 16  }
 0x2c8   :  { %733 = vsyncadd [#allocation5], 4294967280 }
 0x2c9   :  { %527 = vsyncpa [#allocation4], 1 }
 0x2ca   :  { %528 = vsyncpa [#allocation5], 1 }

// kernel: tpu_custom_call.1
= control target key start
LH: loop header
LB: loop body
LE: loop exit
PB: predicated region body
PF: predicated region fallthrough
CT: control target
= control target key end

     0   :  { %13 = vsyncpa [#allocation4], 0  ;;  %s928_s0 = inlined_call_operand.vmem [shape: f32[128,12], index: 0, kind: input, shape index: {}]   ;;  %s929_s1 = inlined_call_operand.vmem [shape: bf16[12,128], index: 1, kind: input, shape index: {}]   ;;  %s930_s2 = inlined_call_operand.vmem [shape: f32[128,128], index: 2, kind: input, shape index: {}]   ;;  %s931_s3 = inlined_call_operand.hbm [shape: bf16[128,128], index: 3, kind: input, shape index: {}]   ;;  %s932_s4 = inlined_call_operand.vmem [shape: f32[1,128], index: 4, kind: input, shape index: {}]   ;;  %s933_s5 = inlined_call_operand.vmem [shape: f32[1,128], index: 5, kind: input, shape index: {}]   ;;  %s934_s6 = inlined_call_operand.<no memory space> [shape: f32[1,1], index: 6, kind: input, shape index: {}]   ;;  %s935_s7 = inlined_call_operand.hbm [shape: f32[1,1,128], index: 7, kind: output, shape index: {}]  }
   0x1   :  { %14 = vsyncpa [#allocation5], 0  ;;  %s734_s24 = smov [#allocation3]  }
   0x2   :  { %s26_s25 = sshll.u32 %s734_s24, 4  ;;  %s27_s25 = int_to_ptr.vmem [resolvable:$true] %s26_s25 }
   0x3   :  { %s698_s26 = scalar_lea.vmem %s27_s25, 1024  ;;  %p703_p1 = scmp.lt.s32.totalorder %s27_s25, %s27_s25 }
   0x4   :  { %p699_p0 = scmp.ne.s32.totalorder %s27_s25, %s698_s26  ;;  %p704_p2 = scmp.lt.s32.totalorder %s698_s26, %s698_s26 }
   0x6   :  { %p705_p3 = por %p704_p2, %p703_p1 }
   0x8   :  { %p706_p4 = pnand %p705_p3, %p699_p0 }
   0xa   :  { %709 = shalt.err (!%p706_p4)
}
   0xb   :  { %s735_s27 = smov 64   ;;  %s736_s28 = smov 4  }
   0xc   :  { %32 = dma.hbm_to_vmem [thread:$0]  %s931_s3, 1024, %s27_s25, [#allocation4], %s735_s27, %s735_s27, %s736_s28  }
   0xd   :  { %730 = dma.done.wait [#allocation4], 1024  }
   0xe   :  { %731 = vsyncadd [#allocation4], 4294966272  ;;  %vm99_vm0 = vcmask 1045504   ;;  %v681_v0 = vld [vmem:[%s929_s1] sm:$0x3f]   ;;  %v44_v2 = vld [vmem:[%s928_s0 + $0x8] sm:$0xff] }
   0xf   :  { %v43_v1 = vld [vmem:[%s928_s0] sm:$0xff]  ;;  %vm74_vm1 = vcmask 97280   ;;  %v45_v3 = vld [vmem:[%s928_s0 + $0x10] sm:$0xff]  ;;  %674 = vmatprep.subr.msk.bf16.mxu1 %vm99_vm0, %v681_v0  ;;  %v101_v4 = vsel %vm99_vm0, %v681_v0, 0  ;;  %v46_v6 = vld [vmem:[%s928_s0 + $0x18] sm:$0xff]  ;;  %vm738_vm2 = vmmov 0  }
  0x10   :  { %v59_v5 = vpack.c.bf16 %v44_v2, %v43_v1  ;;  %v47_v7 = vld [vmem:[%s928_s0 + $0x20] sm:$0xff]  ;;  %v48_v8 = vld [vmem:[%s928_s0 + $0x28] sm:$0xff]  ;;  %590 = vmatpush3.bf16.msra.mxu1 %v101_v4  ;;  %v60_v9 = vpack.c.bf16 %v46_v6, %v45_v3  ;;  %v49_v11 = vld [vmem:[%s928_s0 + $0x30] sm:$0xff]  ;;  %s739_s24 = smov [#allocation6]  }
  0x11   :  { %v61_v10 = vpack.c.bf16 %v48_v8, %v47_v7  ;;  %v50_v12 = vld [vmem:[%s928_s0 + $0x38] sm:$0xff]  ;;  %v51_v13 = vld [vmem:[%s928_s0 + $0x40] sm:$0xff]  ;;  %v52_v14 = vld [vmem:[%s928_s0 + $0x48] sm:$0xff]  ;;  %s520_s25 = sshll.u32 %s739_s24, 4  ;;  %s521_s25 = int_to_ptr.vmem [resolvable:$true] %s520_s25 }
  0x12   :  { %591 = vmatprep.mubr.msk.bf16.mxu1 %vm74_vm1, %v59_v5  ;;  %v682_v15 = vld [vmem:[#allocation3 + $0x38] sm:$0xff]   ;;  %v683_v16 = vld [vmem:[#allocation3 + $0x30] sm:$0xff]   ;;  %v62_v17 = vpack.c.bf16 %v50_v12, %v49_v11  ;;  %v63_v18 = vpack.c.bf16 %v52_v14, %v51_v13  ;;  %v684_v19 = vld [vmem:[#allocation3 + $0x28] sm:$0xff]   ;;  %s710_s26 = scalar_lea.vmem %s521_s25, 16  ;;  %s714_s27 = scalar_lea.vmem %s521_s25, 32 }
  0x13   :  { %592 = vmatmul.mubr.msk.bf16.vlgmr.msra.gmra.mxu1 %vm74_vm1, %v60_v9  ;;  %607 = vmatprep.subr.bf16.mxu1 %v682_v15  ;;  %v53_v20 = vld [vmem:[%s928_s0 + $0x50] sm:$0xff]  ;;  %v54_v21 = vld [vmem:[%s928_s0 + $0x58] sm:$0xff]  ;;  %v55_v22 = vld [vmem:[%s928_s0 + $0x60] sm:$0xff]  ;;  %p711_p5 = scmp.ne.s32.totalorder %s521_s25, %s710_s26  ;;  %p715_p6 = scmp.lt.s32.totalorder %s521_s25, %s521_s25 }
  0x14   :  { %595 = vmatprep.mubr.msk.bf16.mxu1 %vm74_vm1, %v61_v10  ;;  %608 = vmatpush3.bf16.msra.mxu1 %v682_v15  ;;  %v56_v23 = vld [vmem:[%s928_s0 + $0x68] sm:$0xff]  ;;  %v685_v24 = vld [vmem:[#allocation3 + $0x20] sm:$0xff]   ;;  %v64_v25 = vpack.c.bf16 %v54_v21, %v53_v20  ;;  %v686_v27 = vld [vmem:[#allocation3 + $0x18] sm:$0xff]   ;;  %p716_p7 = scmp.lt.s32.totalorder %s714_s27, %s710_s26 }
  0x15   :  { %609 = vmatprep.subr.bf16.mxu1 %v683_v16  ;;  %v65_v26 = vpack.c.bf16 %v56_v23, %v55_v22  ;;  %v57_v28 = vld [vmem:[%s928_s0 + $0x70] sm:$0xff]  ;;  %v58_v29 = vld [vmem:[%s928_s0 + $0x78] sm:$0xff]  ;;  %v688_v32 = vld [vmem:[#allocation3 + $0x8] sm:$0xff]  }
  0x16   :  { %v66_v30 = vpack.c.bf16 %v58_v29, %v57_v28  ;;  %v687_v31 = vld [vmem:[#allocation3 + $0x10] sm:$0xff]   ;;  %v689_v33 = vld [vmem:[#allocation3] sm:$0xff]   ;;  %v203_v37 = vld [vmem:[%s930_s2 + $0x18] sm:$0xff]  ;;  %p717_p8 = por %p716_p7, %p715_p6 }
  0x17   :  { %v200_v36 = vld [vmem:[%s930_s2] sm:$0xff]  ;;  %v202_v38 = vld [vmem:[%s930_s2 + $0x10] sm:$0xff]  ;;  %v201_v40 = vld [vmem:[%s930_s2 + $0x8] sm:$0xff] }
  0x18   :  { %610 = vmatpush3.bf16.msra.mxu1 %v683_v16  ;;  %v204_v52 = vld [vmem:[%s930_s2 + $0x20] sm:$0xff]  ;;  %v207_v53 = vld [vmem:[%s930_s2 + $0x38] sm:$0xff]  ;;  %v206_v55 = vld [vmem:[%s930_s2 + $0x30] sm:$0xff]  ;;  %p718_p9 = pnand %p717_p8, %p711_p5 }
  0x19   :  { %611 = vmatprep.subr.bf16.mxu1 %v684_v19  ;;  %v205_v58 = vld [vmem:[%s930_s2 + $0x28] sm:$0xff]  ;;  %v208_v6 = vld [vmem:[%s930_s2 + $0x40] sm:$0xff]  ;;  %v211_v7 = vld [vmem:[%s930_s2 + $0x58] sm:$0xff] }
  0x1a   :  { %v210_v9 = vld [vmem:[%s930_s2 + $0x50] sm:$0xff]  ;;  %v209_v12 = vld [vmem:[%s930_s2 + $0x48] sm:$0xff] }
  0x1b   :  { %596 = vmatmul.mubr.msk.bf16.gmra.mxu1 %vm74_vm1, %v62_v17 }
  0x1c   :  { %599 = vmatprep.mubr.msk.bf16.mxu1 %vm74_vm1, %v63_v18  ;;  %612 = vmatpush3.bf16.msra.mxu1 %v684_v19 }
  0x1d   :  { %613 = vmatprep.subr.bf16.mxu1 %v685_v24 }
  0x20   :  { %614 = vmatpush3.bf16.msra.mxu1 %v685_v24  ;;  %v212_v24 = vld [vmem:[%s930_s2 + $0x60] sm:$0xff] }
  0x21   :  { %615 = vmatprep.subr.bf16.mxu1 %v686_v27 }
  0x23   :  { %600 = vmatmul.mubr.msk.bf16.gmra.mxu1 %vm74_vm1, %v64_v25  ;;  %v215_v25 = vld [vmem:[%s930_s2 + $0x78] sm:$0xff] }
  0x24   :  { %603 = vmatprep.mubr.msk.bf16.mxu1 %vm74_vm1, %v65_v26  ;;  %616 = vmatpush3.bf16.msra.mxu1 %v686_v27  ;;  %v214_v27 = vld [vmem:[%s930_s2 + $0x70] sm:$0xff] }
  0x25   :  { %617 = vmatprep.subr.bf16.mxu1 %v687_v31 }
  0x28   :  { %618 = vmatpush3.bf16.msra.mxu1 %v687_v31 }
  0x29   :  { %619 = vmatprep.subr.bf16.mxu1 %v688_v32 }
  0x2b   :  { %604 = vmatmul.mubr.msk.bf16.gmra.mxu1 %vm74_vm1, %v66_v30  ;;  %v213_v30 = vld [vmem:[%s930_s2 + $0x68] sm:$0xff] }
  0x2c   :  { %620 = vmatpush3.bf16.msra.mxu1 %v688_v32 }
  0x2d   :  { %621 = vmatprep.subr.bf16.mxu1 %v689_v33 }
  0x30   :  { %622 = vmatpush3.bf16.msra.mxu1 %v689_v33 }
  0xd3   :  { %v593_v34 = vpop.f32.mrf.mxu1 }
  0xd4   :  { %v218_v43 = vadd.f32 %v593_v34, %v202_v38 }
  0xd5   :  { %v137_v35 = vpop.f32.mrf.mxu1 }
  0xd6   :  { %v216_v41 = vadd.f32 %v200_v36, %v137_v35  ;;  %v234_v50 = vmax.f32 %v218_v43, 0.0 }
  0xd7   :  { %v594_v39 = vpop.f32.mrf.mxu1 }
  0xd8   :  { %v219_v42 = vadd.f32 %v594_v39, %v203_v37  ;;  %v232_v48 = vmax.f32 %v216_v41, 0.0 }
  0xd9   :  { %v140_v44 = vpop.f32.mrf.mxu1 }
  0xda   :  { %v217_v45 = vadd.f32 %v201_v40, %v140_v44  ;;  %v235_v46 = vmax.f32 %v219_v42, 0.0  ;;  %v737_v42 = vmov 0.0  }
  0xdb   :  { %v597_v47 = vpop.f32.mrf.mxu1  ;;  %639 = vmatprep.subr.mxu0 %v737_v42  ;;  %671 = vmatprep.mubr.msk.f32.mxu0 %vm738_vm2, %v737_v42 }
  0xdc   :  { %v233_v49 = vmax.f32 %v217_v45, 0.0  ;;  %v249_v56 = vpack.c.bf16 %v235_v46, %v234_v50  ;;  %v222_v61 = vadd.f32 %v597_v47, %v206_v55 }
  0xdd   :  { %v153_v51 = vpop.f32.mrf.mxu1 }
  0xde   :  { %v248_v54 = vpack.c.bf16 %v233_v49, %v232_v48  ;;  %v220_v59 = vadd.f32 %v204_v52, %v153_v51  ;;  %v238_v4 = vmax.f32 %v222_v61, 0.0 }
  0xdf   :  { %v598_v57 = vpop.f32.mrf.mxu1 }
  0xe0   :  { %v223_v60 = vadd.f32 %v598_v57, %v207_v53  ;;  %623 = vmatprep.mubr.bf16.mxu1 %v248_v54  ;;  %v236_v2 = vmax.f32 %v220_v59, 0.0  ;;  %v538_v57 = vld [vmem:[%s932_s4] ss:$0 sm:$0xff] }
  0xe1   :  { %v156_v62 = vpop.f32.mrf.mxu1  ;;  %624 = vmatmul.mubr.bf16.vlgmr.msra.gmra.mxu1 %v249_v56 }
  0xe2   :  { %v221_v63 = vadd.f32 %v205_v58, %v156_v62  ;;  %v239_v0 = vmax.f32 %v223_v60, 0.0 }
  0xe3   :  { %v601_v1 = vpop.f32.mrf.mxu1 }
  0xe4   :  { %v237_v3 = vmax.f32 %v221_v63, 0.0  ;;  %v251_v10 = vpack.c.bf16 %v239_v0, %v238_v4  ;;  %v226_v15 = vadd.f32 %v601_v1, %v210_v9 }
  0xe5   :  { %v169_v5 = vpop.f32.mrf.mxu1 }
  0xe6   :  { %v250_v8 = vpack.c.bf16 %v237_v3, %v236_v2  ;;  %v224_v13 = vadd.f32 %v208_v6, %v169_v5  ;;  %v242_v22 = vmax.f32 %v226_v15, 0.0 }
  0xe7   :  { %v602_v11 = vpop.f32.mrf.mxu1 }
  0xe8   :  { %v227_v14 = vadd.f32 %v602_v11, %v211_v7  ;;  %627 = vmatprep.mubr.bf16.mxu1 %v250_v8  ;;  %v240_v20 = vmax.f32 %v224_v13, 0.0 }
  0xe9   :  { %v172_v16 = vpop.f32.mrf.mxu1  ;;  %628 = vmatmul.mubr.bf16.gmra.mxu1 %v251_v10 }
  0xea   :  { %v225_v17 = vadd.f32 %v209_v12, %v172_v16  ;;  %v243_v18 = vmax.f32 %v227_v14, 0.0 }
  0xeb   :  { %v605_v19 = vpop.f32.mrf.mxu1 }
  0xec   :  { %v241_v21 = vmax.f32 %v225_v17, 0.0  ;;  %v253_v28 = vpack.c.bf16 %v243_v18, %v242_v22  ;;  %v230_v33 = vadd.f32 %v605_v19, %v214_v27 }
  0xed   :  { %v185_v23 = vpop.f32.mrf.mxu1 }
  0xee   :  { %v252_v26 = vpack.c.bf16 %v241_v21, %v240_v20  ;;  %v228_v31 = vadd.f32 %v212_v24, %v185_v23  ;;  %v246_v39 = vmax.f32 %v230_v33, 0.0 }
  0xef   :  { %v606_v29 = vpop.f32.mrf.mxu1 }
  0xf0   :  { %v231_v32 = vadd.f32 %v606_v29, %v215_v25  ;;  %631 = vmatprep.mubr.bf16.mxu1 %v252_v26  ;;  %v244_v37 = vmax.f32 %v228_v31, 0.0  ;;  %v442_v29 = vstv %s934_s6 }
  0xf1   :  { %v188_v34 = vpop.f32.mrf.mxu1  ;;  %632 = vmatmul.mubr.bf16.gmra.mxu1 %v253_v28  ;;  %v440_v28 = vld [vmem:[%s933_s5] sm:$0x1] }
  0xf2   :  { %v229_v35 = vadd.f32 %v213_v30, %v188_v34  ;;  %v247_v36 = vmax.f32 %v231_v32, 0.0 }
  0xf4   :  { %v245_v38 = vmax.f32 %v229_v35, 0.0  ;;  %v255_v41 = vpack.c.bf16 %v247_v36, %v246_v39 }
  0xf6   :  { %v254_v40 = vpack.c.bf16 %v245_v38, %v244_v37 }
  0xf8   :  { %635 = vmatprep.mubr.bf16.mxu1 %v254_v40 }
  0xf9   :  { %636 = vmatmul.mubr.bf16.gmra.mxu1 %v255_v41 }
 0x1a1   :  { %v892_v43 = vpop.f32.mrf.mxu1 }
 0x1a2   :  { %v370_v21 = vadd.f32 %v892_v43, %v538_v57 }
 0x1a3   :  { %v894_v44 = vpop.f32.mrf.mxu1 }
 0x1a4   :  { %v426_v23 = vmax.f32 %v370_v21, 0.0  ;;  %v362_v25 = vadd.f32 %v538_v57, %v894_v44 }
 0x1a5   :  { %v626_v45 = vpop.f32.mrf.mxu1 }
 0x1a6   :  { %v373_v19 = vadd.f32 %v626_v45, %v538_v57  ;;  %v424_v27 = vmax.f32 %v362_v25, 0.0 }
 0x1a7   :  { %v896_v46 = vpop.f32.mrf.mxu1 }
 0x1a8   :  { %v427_v22 = vmax.f32 %v373_v19, 0.0  ;;  %v365_v24 = vadd.f32 %v538_v57, %v896_v46 }
 0x1a9   :  { %v629_v47 = vpop.f32.mrf.mxu1 }
 0x1aa   :  { %v386_v13 = vadd.f32 %v629_v47, %v538_v57  ;;  %v425_v26 = vmax.f32 %v365_v24, 0.0 }
 0x1ab   :  { %v377_v48 = vpop.f32.mrf.mxu1 }
 0x1ac   :  { %v430_v15 = vmax.f32 %v386_v13, 0.0  ;;  %v378_v17 = vadd.f32 %v538_v57, %v377_v48 }
 0x1ad   :  { %v630_v49 = vpop.f32.mrf.mxu1 }
 0x1ae   :  { %v389_v11 = vadd.f32 %v630_v49, %v538_v57  ;;  %v428_v20 = vmax.f32 %v378_v17, 0.0 }
 0x1af   :  { %v380_v50 = vpop.f32.mrf.mxu1 }
 0x1b0   :  { %v431_v14 = vmax.f32 %v389_v11, 0.0  ;;  %v381_v16 = vadd.f32 %v538_v57, %v380_v50 }
 0x1b1   :  { %v633_v51 = vpop.f32.mrf.mxu1 }
 0x1b2   :  { %v402_v5 = vadd.f32 %v633_v51, %v538_v57  ;;  %v429_v18 = vmax.f32 %v381_v16, 0.0 }
 0x1b3   :  { %v393_v52 = vpop.f32.mrf.mxu1 }
 0x1b4   :  { %v434_v7 = vmax.f32 %v402_v5, 0.0  ;;  %v394_v9 = vadd.f32 %v538_v57, %v393_v52 }
 0x1b5   :  { %v634_v53 = vpop.f32.mrf.mxu1 }
 0x1b6   :  { %v405_v3 = vadd.f32 %v634_v53, %v538_v57  ;;  %v432_v12 = vmax.f32 %v394_v9, 0.0 }
 0x1b7   :  { %v396_v54 = vpop.f32.mrf.mxu1 }
 0x1b8   :  { %v435_v6 = vmax.f32 %v405_v3, 0.0  ;;  %v397_v8 = vadd.f32 %v538_v57, %v396_v54 }
 0x1b9   :  { %v637_v55 = vpop.f32.mrf.mxu1 }
 0x1ba   :  { %v418_v60 = vadd.f32 %v637_v55, %v538_v57  ;;  %v433_v10 = vmax.f32 %v397_v8, 0.0 }
 0x1bb   :  { %v409_v56 = vpop.f32.mrf.mxu1 }
 0x1bc   :  { %v438_v63 = vmax.f32 %v418_v60, 0.0  ;;  %v410_v1 = vadd.f32 %v538_v57, %v409_v56 }
 0x1bd   :  { %v638_v58 = vpop.f32.mrf.mxu1 }
 0x1be   :  { %v421_v59 = vadd.f32 %v638_v58, %v538_v57  ;;  %v436_v4 = vmax.f32 %v410_v1, 0.0 }
 0x1bf   :  { %v412_v62 = vpop.f32.mrf.mxu1 }
 0x1c0   :  { %v439_v61 = vmax.f32 %v421_v59, 0.0  ;;  %v413_v0 = vadd.f32 %v538_v57, %v412_v62 }
 0x1c2   :  { %640 = vmatpush3.xpose.msra.mxu0 %v439_v61  ;;  %v437_v2 = vmax.f32 %v413_v0, 0.0 }
 0x1c3   :  { %641 = vmatprep.subr.mxu0 %v737_v42 }
 0x1c6   :  { %642 = vmatpush3.xpose.msra.mxu0 %v438_v63 }
 0x1c7   :  { %643 = vmatprep.subr.mxu0 %v737_v42 }
 0x1ca   :  { %644 = vmatpush3.xpose.msra.mxu0 %v437_v2 }
 0x1cb   :  { %645 = vmatprep.subr.mxu0 %v737_v42 }
 0x1ce   :  { %646 = vmatpush3.xpose.msra.mxu0 %v436_v4 }
 0x1cf   :  { %647 = vmatprep.subr.mxu0 %v737_v42 }
 0x1d2   :  { %648 = vmatpush3.xpose.msra.mxu0 %v435_v6 }
 0x1d3   :  { %649 = vmatprep.subr.mxu0 %v737_v42 }
 0x1d6   :  { %650 = vmatpush3.xpose.msra.mxu0 %v434_v7 }
 0x1d7   :  { %651 = vmatprep.subr.mxu0 %v737_v42 }
 0x1da   :  { %652 = vmatpush3.xpose.msra.mxu0 %v433_v10 }
 0x1db   :  { %653 = vmatprep.subr.mxu0 %v737_v42 }
 0x1de   :  { %654 = vmatpush3.xpose.msra.mxu0 %v432_v12 }
 0x1df   :  { %655 = vmatprep.subr.mxu0 %v737_v42 }
 0x1e2   :  { %656 = vmatpush3.xpose.msra.mxu0 %v431_v14 }
 0x1e3   :  { %657 = vmatprep.subr.mxu0 %v737_v42 }
 0x1e6   :  { %658 = vmatpush3.xpose.msra.mxu0 %v430_v15 }
 0x1e7   :  { %659 = vmatprep.subr.mxu0 %v737_v42 }
 0x1ea   :  { %660 = vmatpush3.xpose.msra.mxu0 %v429_v18 }
 0x1eb   :  { %661 = vmatprep.subr.mxu0 %v737_v42 }
 0x1ee   :  { %662 = vmatpush3.xpose.msra.mxu0 %v428_v20 }
 0x1ef   :  { %663 = vmatprep.subr.mxu0 %v737_v42 }
 0x1f2   :  { %664 = vmatpush3.xpose.msra.mxu0 %v427_v22 }
 0x1f3   :  { %665 = vmatprep.subr.mxu0 %v737_v42 }
 0x1f6   :  { %666 = vmatpush3.xpose.msra.mxu0 %v426_v23 }
 0x1f7   :  { %667 = vmatprep.subr.mxu0 %v737_v42 }
 0x1fa   :  { %668 = vmatpush3.xpose.msra.mxu0 %v425_v26 }
 0x1fb   :  { %669 = vmatprep.subr.mxu0 %v737_v42 }
 0x1fe   :  { %670 = vmatpush3.xpose.msra.mxu0 %v424_v27 }
 0x201   :  { %672 = vmatmul.mubr.f32.vlgmr.msra.gmra.mxu0 %v440_v28 }
 0x2c1   :  { %v509_v30 = vpop.f32.mrf.mxu0 }
 0x2c2   :  { %v510_v31 = vadd.f32 %v509_v30, %v442_v29 }
 0x2c3   :  { %v673_v32 = vpop.f32.mrf.mxu0 }
 0x2c4   :  { %513 = vst [vmem:[#allocation6] sm:$0x1] %v510_v31 }
 0x2c5   :  { %721 = shalt.err (!%p718_p9)
}
 0x2c6   :  { %523 = dma.vmem_to_hbm [thread:$0]  %s521_s25, 16, %s935_s7, [#allocation5]  }
 0x2c7   :  { %732 = dma.done.wait [#allocation5], 16  }
 0x2c8   :  { %733 = vsyncadd [#allocation5], 4294967280 }
 0x2c9   :  { %527 = vsyncpa [#allocation4], 1 }
 0x2ca   :  { %528 = vsyncpa [#allocation5], 1 }

</bundles_post_ra>
